<compile_context>
chip_gen: v5e
topology: v5e:2x2
jax: 0.10.0
libtpu: 0.0.40
codegen_flags: <defaults>
</compile_context>

<pallas_src>
import functools

import jax
import jax.numpy as jnp
import numpy as np
from jax import lax
from jax.experimental import pallas as pl
from jax.experimental.pallas import tpu as pltpu


# --------------------------------------------------------------------------
# Kernel
# --------------------------------------------------------------------------
def _attentive_kernel(x_ref, w_ref, o_ref, *, valid_k, n_bisect):
    """Per-batch-tile: z = x @ W (MXU), then sparsemax along the last axis.

    Sparsemax tau solves  sum_j relu(z_j - tau) = 1  (piecewise-linear,
    strictly decreasing on [max(z)-1, max(z)]).  Bisect ~26 steps (f32
    precision exhausted well before that for a width-1 bracket), then recover
    the exact tau from the identified support set: tau = (sum_support - 1)/k.

    Lanes >= valid_k are padding (lane-dense output); they are masked to a
    large negative value so they never enter z_max, the sums, or the support.
    """
    x = x_ref[...]                                   # (tb, input_dim)
    w = w_ref[...]                                   # (input_dim, K_pad)

    # ---- hot path: MXU matmul (no pre-cast; f32 accumulate) ----
    z = jnp.dot(x, w, preferred_element_type=jnp.float32)     # (tb, K_pad) f32

    k_pad = z.shape[-1]
    if valid_k < k_pad:
        lane = lax.broadcasted_iota(jnp.int32, z.shape, 1)
        z = jnp.where(lane < valid_k, z, jnp.float32(-1e30))  # finite "−inf"

    # ---- sparsemax along last axis (VPU/XLU) ----
    z_max = jnp.max(z, axis=-1, keepdims=True)       # (tb, 1)
    lo = z_max - 1.0
    hi = z_max

    def body(_, carry):
        lo, hi = carry
        mid = 0.5 * (lo + hi)
        f = jnp.sum(jnp.maximum(z - mid, 0.0), axis=-1, keepdims=True) - 1.0
        gt = f > 0.0                                  # root lies above mid
        return jnp.where(gt, mid, lo), jnp.where(gt, hi, mid)

    lo, hi = lax.fori_loop(0, n_bisect, body, (lo, hi), unroll=True)
    tau_approx = 0.5 * (lo + hi)

    # Support set; the max element(s) are always in the support (tau < max(z)),
    # which also guarantees k >= 1.  Padded lanes are far below tau_approx.
    support = jnp.logical_or(z > tau_approx, z >= z_max).astype(jnp.float32)
    k = jnp.sum(support, axis=-1, keepdims=True)
    s = jnp.sum(z * support, axis=-1, keepdims=True)
    tau = (s - 1.0) / k

    o_ref[...] = jnp.maximum(z - tau, 0.0).astype(o_ref.dtype)


# --------------------------------------------------------------------------
# Weight preparation (do ONCE at init, not on the hot path)
# --------------------------------------------------------------------------
def prepare_fc_weight(weight):
    """weight: (output_dim, input_dim) PyTorch nn.Linear layout.
    Returns (input_dim, K_pad) with the feature axis padded to a multiple of
    128 lanes so the kernel's output is lane-dense."""
    output_dim, input_dim = weight.shape
    k_pad = max(128, pl.cdiv(output_dim, 128) * 128)
    w_t = jnp.transpose(weight)                       # (input_dim, output_dim)
    if k_pad > output_dim:
        w_t = jnp.pad(w_t, ((0, 0), (0, k_pad - output_dim)))
    return w_t, output_dim


# --------------------------------------------------------------------------
# Hot-path wrapper
# --------------------------------------------------------------------------
def _choose_tile_b(B, input_dim, k_pad, requested, x_itemsize, w_itemsize):
    """Largest batch tile (multiple of 8, <= requested) whose double-buffered
    working set fits a v7x-safe VMEM budget."""
    budget = 40 * 1024 * 1024                         # conservative for v7x (64 MiB phys)
    w_bytes = 2 * w_itemsize * input_dim * k_pad      # double-buffered weight block
    per_row = 2 * (x_itemsize * input_dim + 4 * k_pad)
    max_rows = max(8, (budget - w_bytes) // max(per_row, 1))
    tb = int(min(requested, max(B, 8), max_rows))
    tb = max(8, (tb // 8) * 8)
    return tb


def attentive_transformer_prepared(processed_feat, w_prepared, output_dim,
                                   *, tile_b=512, n_bisect=26):
    """processed_feat: (B, input_dim); w_prepared: (input_dim, K_pad) from
    prepare_fc_weight.  Returns sparsemax(processed_feat @ W^T, axis=-1)."""
    B, input_dim = processed_feat.shape
    in_w, k_pad = w_prepared.shape
    assert in_w == input_dim

    tb = _choose_tile_b(B, input_dim, k_pad, tile_b,
                        processed_feat.dtype.itemsize, w_prepared.dtype.itemsize)
    # Keep >= 2 grid programs when the batch allows it (v7x has 2 TCs/chip).
    if B >= 16 and pl.cdiv(B, tb) == 1:
        tb = max(8, ((tb // 2) // 8) * 8)

    n_tiles = pl.cdiv(B, tb)
    B_pad = n_tiles * tb
    x = processed_feat
    if B_pad > B:
        x = jnp.pad(x, ((0, B_pad - B), (0, 0)))

    out_dtype = processed_feat.dtype
    buf_bytes = 2 * (tb * input_dim * x.dtype.itemsize
                     + input_dim * k_pad * w_prepared.dtype.itemsize
                     + tb * k_pad * jnp.dtype(out_dtype).itemsize)
    vmem_limit = int(min(max(2 * buf_bytes + (2 << 20), 16 << 20), 48 << 20))

    kernel = functools.partial(_attentive_kernel,
                               valid_k=output_dim, n_bisect=n_bisect)

    out = pl.pallas_call(
        kernel,
        out_shape=jax.ShapeDtypeStruct((B_pad, k_pad), out_dtype),
        grid_spec=pltpu.PrefetchScalarGridSpec(
            num_scalar_prefetch=0,
            grid=(n_tiles,),
            in_specs=[
                pl.BlockSpec((tb, input_dim), lambda i: (i, 0)),
                pl.BlockSpec((input_dim, k_pad), lambda i: (0, 0)),
            ],
            out_specs=pl.BlockSpec((tb, k_pad), lambda i: (i, 0)),
        ),
        compiler_params=pltpu.CompilerParams(
            dimension_semantics=("parallel",),
            vmem_limit_bytes=vmem_limit,
        ),
    )(x, w_prepared)

    return out[:B, :output_dim]


def attentive_transformer(processed_feat, weight, *, tile_b=512, n_bisect=26):
    """Convenience wrapper taking the PyTorch-layout weight (output_dim, input_dim).
    In production, call prepare_fc_weight once and reuse w_prepared."""
    w_prepared, output_dim = prepare_fc_weight(weight)
    return attentive_transformer_prepared(processed_feat, w_prepared, output_dim,
                                           tile_b=tile_b, n_bisect=n_bisect)


# --------------------------------------------------------------------------
# Init + reference + example
# --------------------------------------------------------------------------
def init_fc_weight(key, input_dim, output_dim):
    """Deterministic equivalent of initialize_non_glu (xavier_normal_ w/ gain)."""
    gain = np.sqrt((input_dim + output_dim) / np.sqrt(4 * input_dim))
    std = gain * np.sqrt(2.0 / (input_dim + output_dim))
    # PyTorch nn.Linear weight layout: (output_dim, input_dim)
    return std * jax.random.normal(key, (output_dim, input_dim), dtype=jnp.float32)


def _sparsemax_ref(z):
    """Sort-based exact sparsemax reference (pure JAX)."""
    z_sorted = jnp.sort(z, axis=-1)[..., ::-1]
    rng = jnp.arange(1, z.shape[-1] + 1, dtype=z.dtype)
    cssv = jnp.cumsum(z_sorted, axis=-1) - 1.0
    cond = (z_sorted - cssv / rng) > 0
    k_z = jnp.sum(cond, axis=-1, keepdims=True).astype(jnp.int32)
    tau = jnp.take_along_axis(cssv, k_z - 1, axis=-1) / k_z.astype(z.dtype)
    return jnp.maximum(z - tau, 0.0)


if __name__ == "__main__":
    B, input_dim, output_dim = 16, 32, 16

    key = jax.random.PRNGKey(0)
    k_x, k_w = jax.random.split(key)

    processed_feat = jax.random.normal(k_x, (B, input_dim), dtype=jnp.float32)
    weight = init_fc_weight(k_w, input_dim, output_dim)

    out = attentive_transformer(processed_feat, weight)
    out = jax.block_until_ready(out)

    # Correctness: match the exact (sort-based) sparsemax of x @ W^T.
    ref = _sparsemax_ref(processed_feat @ weight.T)
    np.testing.assert_allclose(np.asarray(out), np.asarray(ref), atol=1e-5)

    # Sanity: sparsemax output is a probability distribution per row.
    row_sums = np.asarray(jnp.sum(out, axis=-1))
    assert out.shape == (B, output_dim)
    assert np.all(np.asarray(out) >= 0.0)
    assert np.allclose(row_sums, 1.0, atol=1e-5), row_sums

    print("KERNEL_OK")
</pallas_src>

<mosaic_0001>
module attributes {stable_mosaic.version = 11 : i64} {
  func.func @_attentive_kernel(%arg0: i32, %arg1: memref<8x32xf32, #tpu.memory_space<vmem>>, %arg2: memref<32x128xf32, #tpu.memory_space<vmem>>, %arg3: memref<8x128xf32, #tpu.memory_space<vmem>>) attributes {dimension_semantics = [#tpu.dimension_semantics<parallel>], iteration_bounds = array<i64: 2>, scalar_prefetch = 0 : i64, scratch_operands = 0 : i64, tpu.core_type = #tpu.core_type<tc>, window_params = [{transform_indices = @transform_0, window_bounds = array<i64: 8, 32>}, {pipeline_mode = #tpu.pipeline_mode<synchronous>, transform_indices = @transform_1, window_bounds = array<i64: 32, 128>}, {transform_indices = @transform_2, window_bounds = array<i64: 8, 128>}]} {
    %c0 = arith.constant 0 : index
    %c0_0 = arith.constant 0 : index
    %0 = vector.load %arg1[%c0, %c0_0] : memref<8x32xf32, #tpu.memory_space<vmem>>, vector<8x32xf32>
    %c0_1 = arith.constant 0 : index
    %c0_2 = arith.constant 0 : index
    %1 = vector.load %arg2[%c0_1, %c0_2] : memref<32x128xf32, #tpu.memory_space<vmem>>, vector<32x128xf32>
    %cst = arith.constant dense<0.000000e+00> : vector<8x128xf32>
    %2 = tpu.matmul %0, %1, %cst {dimension_numbers = #tpu.dot_dimension_numbers<[1], [0], [0], [1], [0, 0, 1, 1], [], []>} : vector<8x32xf32>, vector<32x128xf32>, vector<8x128xf32> -> vector<8x128xf32>
    %3 = tpu.iota {dimensions = array<i32: 1>} : vector<8x128xi32>
    %c16_i32 = arith.constant 16 : i32
    %4 = vector.broadcast %c16_i32 : i32 to vector<8x128xi32>
    %5 = arith.cmpi slt, %3, %4 : vector<8x128xi32>
    %cst_3 = arith.constant -1.000000e+30 : f32
    %6 = vector.broadcast %cst_3 : f32 to vector<8x128xf32>
    %7 = arith.select %5, %2, %6 : vector<8x128xi1>, vector<8x128xf32>
    %cst_4 = arith.constant dense<0xFF800000> : vector<8xf32>
    %8 = vector.multi_reduction <maximumf>, %7, %cst_4 [1] : vector<8x128xf32> to vector<8xf32>
    %9 = vector.shape_cast %8 : vector<8xf32> to vector<8x1xf32>
    %cst_5 = arith.constant 1.000000e+00 : f32
    %10 = vector.broadcast %cst_5 : f32 to vector<8x1xf32>
    %11 = arith.subf %9, %10 : vector<8x1xf32>
    %c0_i32 = arith.constant 0 : i32
    %12 = arith.addf %11, %9 : vector<8x1xf32>
    %cst_6 = arith.constant 5.000000e-01 : f32
    %13 = vector.broadcast %cst_6 : f32 to vector<8x1xf32>
    %14 = arith.mulf %13, %12 : vector<8x1xf32>
    %15 = vector.broadcast %14 : vector<8x1xf32> to vector<8x128xf32>
    %16 = arith.subf %7, %15 : vector<8x128xf32>
    %cst_7 = arith.constant 0.000000e+00 : f32
    %17 = vector.broadcast %cst_7 : f32 to vector<8x128xf32>
    %18 = arith.maximumf %16, %17 : vector<8x128xf32>
    %cst_8 = arith.constant dense<0.000000e+00> : vector<8xf32>
    %19 = vector.multi_reduction <add>, %18, %cst_8 [1] : vector<8x128xf32> to vector<8xf32>
    %20 = vector.shape_cast %19 : vector<8xf32> to vector<8x1xf32>
    %cst_9 = arith.constant 1.000000e+00 : f32
    %21 = vector.broadcast %cst_9 : f32 to vector<8x1xf32>
    %22 = arith.subf %20, %21 : vector<8x1xf32>
    %cst_10 = arith.constant 0.000000e+00 : f32
    %23 = vector.broadcast %cst_10 : f32 to vector<8x1xf32>
    %24 = arith.cmpf ogt, %22, %23 : vector<8x1xf32>
    %25 = arith.select %24, %14, %11 : vector<8x1xi1>, vector<8x1xf32>
    %26 = arith.select %24, %9, %14 : vector<8x1xi1>, vector<8x1xf32>
    %c1_i32 = arith.constant 1 : i32
    %27 = arith.addf %25, %26 : vector<8x1xf32>
    %cst_11 = arith.constant 5.000000e-01 : f32
    %28 = vector.broadcast %cst_11 : f32 to vector<8x1xf32>
    %29 = arith.mulf %28, %27 : vector<8x1xf32>
    %30 = vector.broadcast %29 : vector<8x1xf32> to vector<8x128xf32>
    %31 = arith.subf %7, %30 : vector<8x128xf32>
    %cst_12 = arith.constant 0.000000e+00 : f32
    %32 = vector.broadcast %cst_12 : f32 to vector<8x128xf32>
    %33 = arith.maximumf %31, %32 : vector<8x128xf32>
    %cst_13 = arith.constant dense<0.000000e+00> : vector<8xf32>
    %34 = vector.multi_reduction <add>, %33, %cst_13 [1] : vector<8x128xf32> to vector<8xf32>
    %35 = vector.shape_cast %34 : vector<8xf32> to vector<8x1xf32>
    %cst_14 = arith.constant 1.000000e+00 : f32
    %36 = vector.broadcast %cst_14 : f32 to vector<8x1xf32>
    %37 = arith.subf %35, %36 : vector<8x1xf32>
    %cst_15 = arith.constant 0.000000e+00 : f32
    %38 = vector.broadcast %cst_15 : f32 to vector<8x1xf32>
    %39 = arith.cmpf ogt, %37, %38 : vector<8x1xf32>
    %40 = arith.select %39, %29, %25 : vector<8x1xi1>, vector<8x1xf32>
    %41 = arith.select %39, %26, %29 : vector<8x1xi1>, vector<8x1xf32>
    %c2_i32 = arith.constant 2 : i32
    %42 = arith.addf %40, %41 : vector<8x1xf32>
    %cst_16 = arith.constant 5.000000e-01 : f32
    %43 = vector.broadcast %cst_16 : f32 to vector<8x1xf32>
    %44 = arith.mulf %43, %42 : vector<8x1xf32>
    %45 = vector.broadcast %44 : vector<8x1xf32> to vector<8x128xf32>
    %46 = arith.subf %7, %45 : vector<8x128xf32>
    %cst_17 = arith.constant 0.000000e+00 : f32
    %47 = vector.broadcast %cst_17 : f32 to vector<8x128xf32>
    %48 = arith.maximumf %46, %47 : vector<8x128xf32>
    %cst_18 = arith.constant dense<0.000000e+00> : vector<8xf32>
    %49 = vector.multi_reduction <add>, %48, %cst_18 [1] : vector<8x128xf32> to vector<8xf32>
    %50 = vector.shape_cast %49 : vector<8xf32> to vector<8x1xf32>
    %cst_19 = arith.constant 1.000000e+00 : f32
    %51 = vector.broadcast %cst_19 : f32 to vector<8x1xf32>
    %52 = arith.subf %50, %51 : vector<8x1xf32>
    %cst_20 = arith.constant 0.000000e+00 : f32
    %53 = vector.broadcast %cst_20 : f32 to vector<8x1xf32>
    %54 = arith.cmpf ogt, %52, %53 : vector<8x1xf32>
    %55 = arith.select %54, %44, %40 : vector<8x1xi1>, vector<8x1xf32>
    %56 = arith.select %54, %41, %44 : vector<8x1xi1>, vector<8x1xf32>
    %c3_i32 = arith.constant 3 : i32
    %57 = arith.addf %55, %56 : vector<8x1xf32>
    %cst_21 = arith.constant 5.000000e-01 : f32
    %58 = vector.broadcast %cst_21 : f32 to vector<8x1xf32>
    %59 = arith.mulf %58, %57 : vector<8x1xf32>
    %60 = vector.broadcast %59 : vector<8x1xf32> to vector<8x128xf32>
    %61 = arith.subf %7, %60 : vector<8x128xf32>
    %cst_22 = arith.constant 0.000000e+00 : f32
    %62 = vector.broadcast %cst_22 : f32 to vector<8x128xf32>
    %63 = arith.maximumf %61, %62 : vector<8x128xf32>
    %cst_23 = arith.constant dense<0.000000e+00> : vector<8xf32>
    %64 = vector.multi_reduction <add>, %63, %cst_23 [1] : vector<8x128xf32> to vector<8xf32>
    %65 = vector.shape_cast %64 : vector<8xf32> to vector<8x1xf32>
    %cst_24 = arith.constant 1.000000e+00 : f32
    %66 = vector.broadcast %cst_24 : f32 to vector<8x1xf32>
    %67 = arith.subf %65, %66 : vector<8x1xf32>
    %cst_25 = arith.constant 0.000000e+00 : f32
    %68 = vector.broadcast %cst_25 : f32 to vector<8x1xf32>
    %69 = arith.cmpf ogt, %67, %68 : vector<8x1xf32>
    %70 = arith.select %69, %59, %55 : vector<8x1xi1>, vector<8x1xf32>
    %71 = arith.select %69, %56, %59 : vector<8x1xi1>, vector<8x1xf32>
    %c4_i32 = arith.constant 4 : i32
    %72 = arith.addf %70, %71 : vector<8x1xf32>
    %cst_26 = arith.constant 5.000000e-01 : f32
    %73 = vector.broadcast %cst_26 : f32 to vector<8x1xf32>
    %74 = arith.mulf %73, %72 : vector<8x1xf32>
    %75 = vector.broadcast %74 : vector<8x1xf32> to vector<8x128xf32>
    %76 = arith.subf %7, %75 : vector<8x128xf32>
    %cst_27 = arith.constant 0.000000e+00 : f32
    %77 = vector.broadcast %cst_27 : f32 to vector<8x128xf32>
    %78 = arith.maximumf %76, %77 : vector<8x128xf32>
    %cst_28 = arith.constant dense<0.000000e+00> : vector<8xf32>
    %79 = vector.multi_reduction <add>, %78, %cst_28 [1] : vector<8x128xf32> to vector<8xf32>
    %80 = vector.shape_cast %79 : vector<8xf32> to vector<8x1xf32>
    %cst_29 = arith.constant 1.000000e+00 : f32
    %81 = vector.broadcast %cst_29 : f32 to vector<8x1xf32>
    %82 = arith.subf %80, %81 : vector<8x1xf32>
    %cst_30 = arith.constant 0.000000e+00 : f32
    %83 = vector.broadcast %cst_30 : f32 to vector<8x1xf32>
    %84 = arith.cmpf ogt, %82, %83 : vector<8x1xf32>
    %85 = arith.select %84, %74, %70 : vector<8x1xi1>, vector<8x1xf32>
    %86 = arith.select %84, %71, %74 : vector<8x1xi1>, vector<8x1xf32>
    %c5_i32 = arith.constant 5 : i32
    %87 = arith.addf %85, %86 : vector<8x1xf32>
    %cst_31 = arith.constant 5.000000e-01 : f32
    %88 = vector.broadcast %cst_31 : f32 to vector<8x1xf32>
    %89 = arith.mulf %88, %87 : vector<8x1xf32>
    %90 = vector.broadcast %89 : vector<8x1xf32> to vector<8x128xf32>
    %91 = arith.subf %7, %90 : vector<8x128xf32>
    %cst_32 = arith.constant 0.000000e+00 : f32
    %92 = vector.broadcast %cst_32 : f32 to vector<8x128xf32>
    %93 = arith.maximumf %91, %92 : vector<8x128xf32>
    %cst_33 = arith.constant dense<0.000000e+00> : vector<8xf32>
    %94 = vector.multi_reduction <add>, %93, %cst_33 [1] : vector<8x128xf32> to vector<8xf32>
    %95 = vector.shape_cast %94 : vector<8xf32> to vector<8x1xf32>
    %cst_34 = arith.constant 1.000000e+00 : f32
    %96 = vector.broadcast %cst_34 : f32 to vector<8x1xf32>
    %97 = arith.subf %95, %96 : vector<8x1xf32>
    %cst_35 = arith.constant 0.000000e+00 : f32
    %98 = vector.broadcast %cst_35 : f32 to vector<8x1xf32>
    %99 = arith.cmpf ogt, %97, %98 : vector<8x1xf32>
    %100 = arith.select %99, %89, %85 : vector<8x1xi1>, vector<8x1xf32>
    %101 = arith.select %99, %86, %89 : vector<8x1xi1>, vector<8x1xf32>
    %c6_i32 = arith.constant 6 : i32
    %102 = arith.addf %100, %101 : vector<8x1xf32>
    %cst_36 = arith.constant 5.000000e-01 : f32
    %103 = vector.broadcast %cst_36 : f32 to vector<8x1xf32>
    %104 = arith.mulf %103, %102 : vector<8x1xf32>
    %105 = vector.broadcast %104 : vector<8x1xf32> to vector<8x128xf32>
    %106 = arith.subf %7, %105 : vector<8x128xf32>
    %cst_37 = arith.constant 0.000000e+00 : f32
    %107 = vector.broadcast %cst_37 : f32 to vector<8x128xf32>
    %108 = arith.maximumf %106, %107 : vector<8x128xf32>
    %cst_38 = arith.constant dense<0.000000e+00> : vector<8xf32>
    %109 = vector.multi_reduction <add>, %108, %cst_38 [1] : vector<8x128xf32> to vector<8xf32>
    %110 = vector.shape_cast %109 : vector<8xf32> to vector<8x1xf32>
    %cst_39 = arith.constant 1.000000e+00 : f32
    %111 = vector.broadcast %cst_39 : f32 to vector<8x1xf32>
    %112 = arith.subf %110, %111 : vector<8x1xf32>
    %cst_40 = arith.constant 0.000000e+00 : f32
    %113 = vector.broadcast %cst_40 : f32 to vector<8x1xf32>
    %114 = arith.cmpf ogt, %112, %113 : vector<8x1xf32>
    %115 = arith.select %114, %104, %100 : vector<8x1xi1>, vector<8x1xf32>
    %116 = arith.select %114, %101, %104 : vector<8x1xi1>, vector<8x1xf32>
    %c7_i32 = arith.constant 7 : i32
    %117 = arith.addf %115, %116 : vector<8x1xf32>
    %cst_41 = arith.constant 5.000000e-01 : f32
    %118 = vector.broadcast %cst_41 : f32 to vector<8x1xf32>
    %119 = arith.mulf %118, %117 : vector<8x1xf32>
    %120 = vector.broadcast %119 : vector<8x1xf32> to vector<8x128xf32>
    %121 = arith.subf %7, %120 : vector<8x128xf32>
    %cst_42 = arith.constant 0.000000e+00 : f32
    %122 = vector.broadcast %cst_42 : f32 to vector<8x128xf32>
    %123 = arith.maximumf %121, %122 : vector<8x128xf32>
    %cst_43 = arith.constant dense<0.000000e+00> : vector<8xf32>
    %124 = vector.multi_reduction <add>, %123, %cst_43 [1] : vector<8x128xf32> to vector<8xf32>
    %125 = vector.shape_cast %124 : vector<8xf32> to vector<8x1xf32>
    %cst_44 = arith.constant 1.000000e+00 : f32
    %126 = vector.broadcast %cst_44 : f32 to vector<8x1xf32>
    %127 = arith.subf %125, %126 : vector<8x1xf32>
    %cst_45 = arith.constant 0.000000e+00 : f32
    %128 = vector.broadcast %cst_45 : f32 to vector<8x1xf32>
    %129 = arith.cmpf ogt, %127, %128 : vector<8x1xf32>
    %130 = arith.select %129, %119, %115 : vector<8x1xi1>, vector<8x1xf32>
    %131 = arith.select %129, %116, %119 : vector<8x1xi1>, vector<8x1xf32>
    %c8_i32 = arith.constant 8 : i32
    %132 = arith.addf %130, %131 : vector<8x1xf32>
    %cst_46 = arith.constant 5.000000e-01 : f32
    %133 = vector.broadcast %cst_46 : f32 to vector<8x1xf32>
    %134 = arith.mulf %133, %132 : vector<8x1xf32>
    %135 = vector.broadcast %134 : vector<8x1xf32> to vector<8x128xf32>
    %136 = arith.subf %7, %135 : vector<8x128xf32>
    %cst_47 = arith.constant 0.000000e+00 : f32
    %137 = vector.broadcast %cst_47 : f32 to vector<8x128xf32>
    %138 = arith.maximumf %136, %137 : vector<8x128xf32>
    %cst_48 = arith.constant dense<0.000000e+00> : vector<8xf32>
    %139 = vector.multi_reduction <add>, %138, %cst_48 [1] : vector<8x128xf32> to vector<8xf32>
    %140 = vector.shape_cast %139 : vector<8xf32> to vector<8x1xf32>
    %cst_49 = arith.constant 1.000000e+00 : f32
    %141 = vector.broadcast %cst_49 : f32 to vector<8x1xf32>
    %142 = arith.subf %140, %141 : vector<8x1xf32>
    %cst_50 = arith.constant 0.000000e+00 : f32
    %143 = vector.broadcast %cst_50 : f32 to vector<8x1xf32>
    %144 = arith.cmpf ogt, %142, %143 : vector<8x1xf32>
    %145 = arith.select %144, %134, %130 : vector<8x1xi1>, vector<8x1xf32>
    %146 = arith.select %144, %131, %134 : vector<8x1xi1>, vector<8x1xf32>
    %c9_i32 = arith.constant 9 : i32
    %147 = arith.addf %145, %146 : vector<8x1xf32>
    %cst_51 = arith.constant 5.000000e-01 : f32
    %148 = vector.broadcast %cst_51 : f32 to vector<8x1xf32>
    %149 = arith.mulf %148, %147 : vector<8x1xf32>
    %150 = vector.broadcast %149 : vector<8x1xf32> to vector<8x128xf32>
    %151 = arith.subf %7, %150 : vector<8x128xf32>
    %cst_52 = arith.constant 0.000000e+00 : f32
    %152 = vector.broadcast %cst_52 : f32 to vector<8x128xf32>
    %153 = arith.maximumf %151, %152 : vector<8x128xf32>
    %cst_53 = arith.constant dense<0.000000e+00> : vector<8xf32>
    %154 = vector.multi_reduction <add>, %153, %cst_53 [1] : vector<8x128xf32> to vector<8xf32>
    %155 = vector.shape_cast %154 : vector<8xf32> to vector<8x1xf32>
    %cst_54 = arith.constant 1.000000e+00 : f32
    %156 = vector.broadcast %cst_54 : f32 to vector<8x1xf32>
    %157 = arith.subf %155, %156 : vector<8x1xf32>
    %cst_55 = arith.constant 0.000000e+00 : f32
    %158 = vector.broadcast %cst_55 : f32 to vector<8x1xf32>
    %159 = arith.cmpf ogt, %157, %158 : vector<8x1xf32>
    %160 = arith.select %159, %149, %145 : vector<8x1xi1>, vector<8x1xf32>
    %161 = arith.select %159, %146, %149 : vector<8x1xi1>, vector<8x1xf32>
    %c10_i32 = arith.constant 10 : i32
    %162 = arith.addf %160, %161 : vector<8x1xf32>
    %cst_56 = arith.constant 5.000000e-01 : f32
    %163 = vector.broadcast %cst_56 : f32 to vector<8x1xf32>
    %164 = arith.mulf %163, %162 : vector<8x1xf32>
    %165 = vector.broadcast %164 : vector<8x1xf32> to vector<8x128xf32>
    %166 = arith.subf %7, %165 : vector<8x128xf32>
    %cst_57 = arith.constant 0.000000e+00 : f32
    %167 = vector.broadcast %cst_57 : f32 to vector<8x128xf32>
    %168 = arith.maximumf %166, %167 : vector<8x128xf32>
    %cst_58 = arith.constant dense<0.000000e+00> : vector<8xf32>
    %169 = vector.multi_reduction <add>, %168, %cst_58 [1] : vector<8x128xf32> to vector<8xf32>
    %170 = vector.shape_cast %169 : vector<8xf32> to vector<8x1xf32>
    %cst_59 = arith.constant 1.000000e+00 : f32
    %171 = vector.broadcast %cst_59 : f32 to vector<8x1xf32>
    %172 = arith.subf %170, %171 : vector<8x1xf32>
    %cst_60 = arith.constant 0.000000e+00 : f32
    %173 = vector.broadcast %cst_60 : f32 to vector<8x1xf32>
    %174 = arith.cmpf ogt, %172, %173 : vector<8x1xf32>
    %175 = arith.select %174, %164, %160 : vector<8x1xi1>, vector<8x1xf32>
    %176 = arith.select %174, %161, %164 : vector<8x1xi1>, vector<8x1xf32>
    %c11_i32 = arith.constant 11 : i32
    %177 = arith.addf %175, %176 : vector<8x1xf32>
    %cst_61 = arith.constant 5.000000e-01 : f32
    %178 = vector.broadcast %cst_61 : f32 to vector<8x1xf32>
    %179 = arith.mulf %178, %177 : vector<8x1xf32>
    %180 = vector.broadcast %179 : vector<8x1xf32> to vector<8x128xf32>
    %181 = arith.subf %7, %180 : vector<8x128xf32>
    %cst_62 = arith.constant 0.000000e+00 : f32
    %182 = vector.broadcast %cst_62 : f32 to vector<8x128xf32>
    %183 = arith.maximumf %181, %182 : vector<8x128xf32>
    %cst_63 = arith.constant dense<0.000000e+00> : vector<8xf32>
    %184 = vector.multi_reduction <add>, %183, %cst_63 [1] : vector<8x128xf32> to vector<8xf32>
    %185 = vector.shape_cast %184 : vector<8xf32> to vector<8x1xf32>
    %cst_64 = arith.constant 1.000000e+00 : f32
    %186 = vector.broadcast %cst_64 : f32 to vector<8x1xf32>
    %187 = arith.subf %185, %186 : vector<8x1xf32>
    %cst_65 = arith.constant 0.000000e+00 : f32
    %188 = vector.broadcast %cst_65 : f32 to vector<8x1xf32>
    %189 = arith.cmpf ogt, %187, %188 : vector<8x1xf32>
    %190 = arith.select %189, %179, %175 : vector<8x1xi1>, vector<8x1xf32>
    %191 = arith.select %189, %176, %179 : vector<8x1xi1>, vector<8x1xf32>
    %c12_i32 = arith.constant 12 : i32
    %192 = arith.addf %190, %191 : vector<8x1xf32>
    %cst_66 = arith.constant 5.000000e-01 : f32
    %193 = vector.broadcast %cst_66 : f32 to vector<8x1xf32>
    %194 = arith.mulf %193, %192 : vector<8x1xf32>
    %195 = vector.broadcast %194 : vector<8x1xf32> to vector<8x128xf32>
    %196 = arith.subf %7, %195 : vector<8x128xf32>
    %cst_67 = arith.constant 0.000000e+00 : f32
    %197 = vector.broadcast %cst_67 : f32 to vector<8x128xf32>
    %198 = arith.maximumf %196, %197 : vector<8x128xf32>
    %cst_68 = arith.constant dense<0.000000e+00> : vector<8xf32>
    %199 = vector.multi_reduction <add>, %198, %cst_68 [1] : vector<8x128xf32> to vector<8xf32>
    %200 = vector.shape_cast %199 : vector<8xf32> to vector<8x1xf32>
    %cst_69 = arith.constant 1.000000e+00 : f32
    %201 = vector.broadcast %cst_69 : f32 to vector<8x1xf32>
    %202 = arith.subf %200, %201 : vector<8x1xf32>
    %cst_70 = arith.constant 0.000000e+00 : f32
    %203 = vector.broadcast %cst_70 : f32 to vector<8x1xf32>
    %204 = arith.cmpf ogt, %202, %203 : vector<8x1xf32>
    %205 = arith.select %204, %194, %190 : vector<8x1xi1>, vector<8x1xf32>
    %206 = arith.select %204, %191, %194 : vector<8x1xi1>, vector<8x1xf32>
    %c13_i32 = arith.constant 13 : i32
    %207 = arith.addf %205, %206 : vector<8x1xf32>
    %cst_71 = arith.constant 5.000000e-01 : f32
    %208 = vector.broadcast %cst_71 : f32 to vector<8x1xf32>
    %209 = arith.mulf %208, %207 : vector<8x1xf32>
    %210 = vector.broadcast %209 : vector<8x1xf32> to vector<8x128xf32>
    %211 = arith.subf %7, %210 : vector<8x128xf32>
    %cst_72 = arith.constant 0.000000e+00 : f32
    %212 = vector.broadcast %cst_72 : f32 to vector<8x128xf32>
    %213 = arith.maximumf %211, %212 : vector<8x128xf32>
    %cst_73 = arith.constant dense<0.000000e+00> : vector<8xf32>
    %214 = vector.multi_reduction <add>, %213, %cst_73 [1] : vector<8x128xf32> to vector<8xf32>
    %215 = vector.shape_cast %214 : vector<8xf32> to vector<8x1xf32>
    %cst_74 = arith.constant 1.000000e+00 : f32
    %216 = vector.broadcast %cst_74 : f32 to vector<8x1xf32>
    %217 = arith.subf %215, %216 : vector<8x1xf32>
    %cst_75 = arith.constant 0.000000e+00 : f32
    %218 = vector.broadcast %cst_75 : f32 to vector<8x1xf32>
    %219 = arith.cmpf ogt, %217, %218 : vector<8x1xf32>
    %220 = arith.select %219, %209, %205 : vector<8x1xi1>, vector<8x1xf32>
    %221 = arith.select %219, %206, %209 : vector<8x1xi1>, vector<8x1xf32>
    %c14_i32 = arith.constant 14 : i32
    %222 = arith.addf %220, %221 : vector<8x1xf32>
    %cst_76 = arith.constant 5.000000e-01 : f32
    %223 = vector.broadcast %cst_76 : f32 to vector<8x1xf32>
    %224 = arith.mulf %223, %222 : vector<8x1xf32>
    %225 = vector.broadcast %224 : vector<8x1xf32> to vector<8x128xf32>
    %226 = arith.subf %7, %225 : vector<8x128xf32>
    %cst_77 = arith.constant 0.000000e+00 : f32
    %227 = vector.broadcast %cst_77 : f32 to vector<8x128xf32>
    %228 = arith.maximumf %226, %227 : vector<8x128xf32>
    %cst_78 = arith.constant dense<0.000000e+00> : vector<8xf32>
    %229 = vector.multi_reduction <add>, %228, %cst_78 [1] : vector<8x128xf32> to vector<8xf32>
    %230 = vector.shape_cast %229 : vector<8xf32> to vector<8x1xf32>
    %cst_79 = arith.constant 1.000000e+00 : f32
    %231 = vector.broadcast %cst_79 : f32 to vector<8x1xf32>
    %232 = arith.subf %230, %231 : vector<8x1xf32>
    %cst_80 = arith.constant 0.000000e+00 : f32
    %233 = vector.broadcast %cst_80 : f32 to vector<8x1xf32>
    %234 = arith.cmpf ogt, %232, %233 : vector<8x1xf32>
    %235 = arith.select %234, %224, %220 : vector<8x1xi1>, vector<8x1xf32>
    %236 = arith.select %234, %221, %224 : vector<8x1xi1>, vector<8x1xf32>
    %c15_i32 = arith.constant 15 : i32
    %237 = arith.addf %235, %236 : vector<8x1xf32>
    %cst_81 = arith.constant 5.000000e-01 : f32
    %238 = vector.broadcast %cst_81 : f32 to vector<8x1xf32>
    %239 = arith.mulf %238, %237 : vector<8x1xf32>
    %240 = vector.broadcast %239 : vector<8x1xf32> to vector<8x128xf32>
    %241 = arith.subf %7, %240 : vector<8x128xf32>
    %cst_82 = arith.constant 0.000000e+00 : f32
    %242 = vector.broadcast %cst_82 : f32 to vector<8x128xf32>
    %243 = arith.maximumf %241, %242 : vector<8x128xf32>
    %cst_83 = arith.constant dense<0.000000e+00> : vector<8xf32>
    %244 = vector.multi_reduction <add>, %243, %cst_83 [1] : vector<8x128xf32> to vector<8xf32>
    %245 = vector.shape_cast %244 : vector<8xf32> to vector<8x1xf32>
    %cst_84 = arith.constant 1.000000e+00 : f32
    %246 = vector.broadcast %cst_84 : f32 to vector<8x1xf32>
    %247 = arith.subf %245, %246 : vector<8x1xf32>
    %cst_85 = arith.constant 0.000000e+00 : f32
    %248 = vector.broadcast %cst_85 : f32 to vector<8x1xf32>
    %249 = arith.cmpf ogt, %247, %248 : vector<8x1xf32>
    %250 = arith.select %249, %239, %235 : vector<8x1xi1>, vector<8x1xf32>
    %251 = arith.select %249, %236, %239 : vector<8x1xi1>, vector<8x1xf32>
    %c16_i32_86 = arith.constant 16 : i32
    %252 = arith.addf %250, %251 : vector<8x1xf32>
    %cst_87 = arith.constant 5.000000e-01 : f32
    %253 = vector.broadcast %cst_87 : f32 to vector<8x1xf32>
    %254 = arith.mulf %253, %252 : vector<8x1xf32>
    %255 = vector.broadcast %254 : vector<8x1xf32> to vector<8x128xf32>
    %256 = arith.subf %7, %255 : vector<8x128xf32>
    %cst_88 = arith.constant 0.000000e+00 : f32
    %257 = vector.broadcast %cst_88 : f32 to vector<8x128xf32>
    %258 = arith.maximumf %256, %257 : vector<8x128xf32>
    %cst_89 = arith.constant dense<0.000000e+00> : vector<8xf32>
    %259 = vector.multi_reduction <add>, %258, %cst_89 [1] : vector<8x128xf32> to vector<8xf32>
    %260 = vector.shape_cast %259 : vector<8xf32> to vector<8x1xf32>
    %cst_90 = arith.constant 1.000000e+00 : f32
    %261 = vector.broadcast %cst_90 : f32 to vector<8x1xf32>
    %262 = arith.subf %260, %261 : vector<8x1xf32>
    %cst_91 = arith.constant 0.000000e+00 : f32
    %263 = vector.broadcast %cst_91 : f32 to vector<8x1xf32>
    %264 = arith.cmpf ogt, %262, %263 : vector<8x1xf32>
    %265 = arith.select %264, %254, %250 : vector<8x1xi1>, vector<8x1xf32>
    %266 = arith.select %264, %251, %254 : vector<8x1xi1>, vector<8x1xf32>
    %c17_i32 = arith.constant 17 : i32
    %267 = arith.addf %265, %266 : vector<8x1xf32>
    %cst_92 = arith.constant 5.000000e-01 : f32
    %268 = vector.broadcast %cst_92 : f32 to vector<8x1xf32>
    %269 = arith.mulf %268, %267 : vector<8x1xf32>
    %270 = vector.broadcast %269 : vector<8x1xf32> to vector<8x128xf32>
    %271 = arith.subf %7, %270 : vector<8x128xf32>
    %cst_93 = arith.constant 0.000000e+00 : f32
    %272 = vector.broadcast %cst_93 : f32 to vector<8x128xf32>
    %273 = arith.maximumf %271, %272 : vector<8x128xf32>
    %cst_94 = arith.constant dense<0.000000e+00> : vector<8xf32>
    %274 = vector.multi_reduction <add>, %273, %cst_94 [1] : vector<8x128xf32> to vector<8xf32>
    %275 = vector.shape_cast %274 : vector<8xf32> to vector<8x1xf32>
    %cst_95 = arith.constant 1.000000e+00 : f32
    %276 = vector.broadcast %cst_95 : f32 to vector<8x1xf32>
    %277 = arith.subf %275, %276 : vector<8x1xf32>
    %cst_96 = arith.constant 0.000000e+00 : f32
    %278 = vector.broadcast %cst_96 : f32 to vector<8x1xf32>
    %279 = arith.cmpf ogt, %277, %278 : vector<8x1xf32>
    %280 = arith.select %279, %269, %265 : vector<8x1xi1>, vector<8x1xf32>
    %281 = arith.select %279, %266, %269 : vector<8x1xi1>, vector<8x1xf32>
    %c18_i32 = arith.constant 18 : i32
    %282 = arith.addf %280, %281 : vector<8x1xf32>
    %cst_97 = arith.constant 5.000000e-01 : f32
    %283 = vector.broadcast %cst_97 : f32 to vector<8x1xf32>
    %284 = arith.mulf %283, %282 : vector<8x1xf32>
    %285 = vector.broadcast %284 : vector<8x1xf32> to vector<8x128xf32>
    %286 = arith.subf %7, %285 : vector<8x128xf32>
    %cst_98 = arith.constant 0.000000e+00 : f32
    %287 = vector.broadcast %cst_98 : f32 to vector<8x128xf32>
    %288 = arith.maximumf %286, %287 : vector<8x128xf32>
    %cst_99 = arith.constant dense<0.000000e+00> : vector<8xf32>
    %289 = vector.multi_reduction <add>, %288, %cst_99 [1] : vector<8x128xf32> to vector<8xf32>
    %290 = vector.shape_cast %289 : vector<8xf32> to vector<8x1xf32>
    %cst_100 = arith.constant 1.000000e+00 : f32
    %291 = vector.broadcast %cst_100 : f32 to vector<8x1xf32>
    %292 = arith.subf %290, %291 : vector<8x1xf32>
    %cst_101 = arith.constant 0.000000e+00 : f32
    %293 = vector.broadcast %cst_101 : f32 to vector<8x1xf32>
    %294 = arith.cmpf ogt, %292, %293 : vector<8x1xf32>
    %295 = arith.select %294, %284, %280 : vector<8x1xi1>, vector<8x1xf32>
    %296 = arith.select %294, %281, %284 : vector<8x1xi1>, vector<8x1xf32>
    %c19_i32 = arith.constant 19 : i32
    %297 = arith.addf %295, %296 : vector<8x1xf32>
    %cst_102 = arith.constant 5.000000e-01 : f32
    %298 = vector.broadcast %cst_102 : f32 to vector<8x1xf32>
    %299 = arith.mulf %298, %297 : vector<8x1xf32>
    %300 = vector.broadcast %299 : vector<8x1xf32> to vector<8x128xf32>
    %301 = arith.subf %7, %300 : vector<8x128xf32>
    %cst_103 = arith.constant 0.000000e+00 : f32
    %302 = vector.broadcast %cst_103 : f32 to vector<8x128xf32>
    %303 = arith.maximumf %301, %302 : vector<8x128xf32>
    %cst_104 = arith.constant dense<0.000000e+00> : vector<8xf32>
    %304 = vector.multi_reduction <add>, %303, %cst_104 [1] : vector<8x128xf32> to vector<8xf32>
    %305 = vector.shape_cast %304 : vector<8xf32> to vector<8x1xf32>
    %cst_105 = arith.constant 1.000000e+00 : f32
    %306 = vector.broadcast %cst_105 : f32 to vector<8x1xf32>
    %307 = arith.subf %305, %306 : vector<8x1xf32>
    %cst_106 = arith.constant 0.000000e+00 : f32
    %308 = vector.broadcast %cst_106 : f32 to vector<8x1xf32>
    %309 = arith.cmpf ogt, %307, %308 : vector<8x1xf32>
    %310 = arith.select %309, %299, %295 : vector<8x1xi1>, vector<8x1xf32>
    %311 = arith.select %309, %296, %299 : vector<8x1xi1>, vector<8x1xf32>
    %c20_i32 = arith.constant 20 : i32
    %312 = arith.addf %310, %311 : vector<8x1xf32>
    %cst_107 = arith.constant 5.000000e-01 : f32
    %313 = vector.broadcast %cst_107 : f32 to vector<8x1xf32>
    %314 = arith.mulf %313, %312 : vector<8x1xf32>
    %315 = vector.broadcast %314 : vector<8x1xf32> to vector<8x128xf32>
    %316 = arith.subf %7, %315 : vector<8x128xf32>
    %cst_108 = arith.constant 0.000000e+00 : f32
    %317 = vector.broadcast %cst_108 : f32 to vector<8x128xf32>
    %318 = arith.maximumf %316, %317 : vector<8x128xf32>
    %cst_109 = arith.constant dense<0.000000e+00> : vector<8xf32>
    %319 = vector.multi_reduction <add>, %318, %cst_109 [1] : vector<8x128xf32> to vector<8xf32>
    %320 = vector.shape_cast %319 : vector<8xf32> to vector<8x1xf32>
    %cst_110 = arith.constant 1.000000e+00 : f32
    %321 = vector.broadcast %cst_110 : f32 to vector<8x1xf32>
    %322 = arith.subf %320, %321 : vector<8x1xf32>
    %cst_111 = arith.constant 0.000000e+00 : f32
    %323 = vector.broadcast %cst_111 : f32 to vector<8x1xf32>
    %324 = arith.cmpf ogt, %322, %323 : vector<8x1xf32>
    %325 = arith.select %324, %314, %310 : vector<8x1xi1>, vector<8x1xf32>
    %326 = arith.select %324, %311, %314 : vector<8x1xi1>, vector<8x1xf32>
    %c21_i32 = arith.constant 21 : i32
    %327 = arith.addf %325, %326 : vector<8x1xf32>
    %cst_112 = arith.constant 5.000000e-01 : f32
    %328 = vector.broadcast %cst_112 : f32 to vector<8x1xf32>
    %329 = arith.mulf %328, %327 : vector<8x1xf32>
    %330 = vector.broadcast %329 : vector<8x1xf32> to vector<8x128xf32>
    %331 = arith.subf %7, %330 : vector<8x128xf32>
    %cst_113 = arith.constant 0.000000e+00 : f32
    %332 = vector.broadcast %cst_113 : f32 to vector<8x128xf32>
    %333 = arith.maximumf %331, %332 : vector<8x128xf32>
    %cst_114 = arith.constant dense<0.000000e+00> : vector<8xf32>
    %334 = vector.multi_reduction <add>, %333, %cst_114 [1] : vector<8x128xf32> to vector<8xf32>
    %335 = vector.shape_cast %334 : vector<8xf32> to vector<8x1xf32>
    %cst_115 = arith.constant 1.000000e+00 : f32
    %336 = vector.broadcast %cst_115 : f32 to vector<8x1xf32>
    %337 = arith.subf %335, %336 : vector<8x1xf32>
    %cst_116 = arith.constant 0.000000e+00 : f32
    %338 = vector.broadcast %cst_116 : f32 to vector<8x1xf32>
    %339 = arith.cmpf ogt, %337, %338 : vector<8x1xf32>
    %340 = arith.select %339, %329, %325 : vector<8x1xi1>, vector<8x1xf32>
    %341 = arith.select %339, %326, %329 : vector<8x1xi1>, vector<8x1xf32>
    %c22_i32 = arith.constant 22 : i32
    %342 = arith.addf %340, %341 : vector<8x1xf32>
    %cst_117 = arith.constant 5.000000e-01 : f32
    %343 = vector.broadcast %cst_117 : f32 to vector<8x1xf32>
    %344 = arith.mulf %343, %342 : vector<8x1xf32>
    %345 = vector.broadcast %344 : vector<8x1xf32> to vector<8x128xf32>
    %346 = arith.subf %7, %345 : vector<8x128xf32>
    %cst_118 = arith.constant 0.000000e+00 : f32
    %347 = vector.broadcast %cst_118 : f32 to vector<8x128xf32>
    %348 = arith.maximumf %346, %347 : vector<8x128xf32>
    %cst_119 = arith.constant dense<0.000000e+00> : vector<8xf32>
    %349 = vector.multi_reduction <add>, %348, %cst_119 [1] : vector<8x128xf32> to vector<8xf32>
    %350 = vector.shape_cast %349 : vector<8xf32> to vector<8x1xf32>
    %cst_120 = arith.constant 1.000000e+00 : f32
    %351 = vector.broadcast %cst_120 : f32 to vector<8x1xf32>
    %352 = arith.subf %350, %351 : vector<8x1xf32>
    %cst_121 = arith.constant 0.000000e+00 : f32
    %353 = vector.broadcast %cst_121 : f32 to vector<8x1xf32>
    %354 = arith.cmpf ogt, %352, %353 : vector<8x1xf32>
    %355 = arith.select %354, %344, %340 : vector<8x1xi1>, vector<8x1xf32>
    %356 = arith.select %354, %341, %344 : vector<8x1xi1>, vector<8x1xf32>
    %c23_i32 = arith.constant 23 : i32
    %357 = arith.addf %355, %356 : vector<8x1xf32>
    %cst_122 = arith.constant 5.000000e-01 : f32
    %358 = vector.broadcast %cst_122 : f32 to vector<8x1xf32>
    %359 = arith.mulf %358, %357 : vector<8x1xf32>
    %360 = vector.broadcast %359 : vector<8x1xf32> to vector<8x128xf32>
    %361 = arith.subf %7, %360 : vector<8x128xf32>
    %cst_123 = arith.constant 0.000000e+00 : f32
    %362 = vector.broadcast %cst_123 : f32 to vector<8x128xf32>
    %363 = arith.maximumf %361, %362 : vector<8x128xf32>
    %cst_124 = arith.constant dense<0.000000e+00> : vector<8xf32>
    %364 = vector.multi_reduction <add>, %363, %cst_124 [1] : vector<8x128xf32> to vector<8xf32>
    %365 = vector.shape_cast %364 : vector<8xf32> to vector<8x1xf32>
    %cst_125 = arith.constant 1.000000e+00 : f32
    %366 = vector.broadcast %cst_125 : f32 to vector<8x1xf32>
    %367 = arith.subf %365, %366 : vector<8x1xf32>
    %cst_126 = arith.constant 0.000000e+00 : f32
    %368 = vector.broadcast %cst_126 : f32 to vector<8x1xf32>
    %369 = arith.cmpf ogt, %367, %368 : vector<8x1xf32>
    %370 = arith.select %369, %359, %355 : vector<8x1xi1>, vector<8x1xf32>
    %371 = arith.select %369, %356, %359 : vector<8x1xi1>, vector<8x1xf32>
    %c24_i32 = arith.constant 24 : i32
    %372 = arith.addf %370, %371 : vector<8x1xf32>
    %cst_127 = arith.constant 5.000000e-01 : f32
    %373 = vector.broadcast %cst_127 : f32 to vector<8x1xf32>
    %374 = arith.mulf %373, %372 : vector<8x1xf32>
    %375 = vector.broadcast %374 : vector<8x1xf32> to vector<8x128xf32>
    %376 = arith.subf %7, %375 : vector<8x128xf32>
    %cst_128 = arith.constant 0.000000e+00 : f32
    %377 = vector.broadcast %cst_128 : f32 to vector<8x128xf32>
    %378 = arith.maximumf %376, %377 : vector<8x128xf32>
    %cst_129 = arith.constant dense<0.000000e+00> : vector<8xf32>
    %379 = vector.multi_reduction <add>, %378, %cst_129 [1] : vector<8x128xf32> to vector<8xf32>
    %380 = vector.shape_cast %379 : vector<8xf32> to vector<8x1xf32>
    %cst_130 = arith.constant 1.000000e+00 : f32
    %381 = vector.broadcast %cst_130 : f32 to vector<8x1xf32>
    %382 = arith.subf %380, %381 : vector<8x1xf32>
    %cst_131 = arith.constant 0.000000e+00 : f32
    %383 = vector.broadcast %cst_131 : f32 to vector<8x1xf32>
    %384 = arith.cmpf ogt, %382, %383 : vector<8x1xf32>
    %385 = arith.select %384, %374, %370 : vector<8x1xi1>, vector<8x1xf32>
    %386 = arith.select %384, %371, %374 : vector<8x1xi1>, vector<8x1xf32>
    %c25_i32 = arith.constant 25 : i32
    %387 = arith.addf %385, %386 : vector<8x1xf32>
    %cst_132 = arith.constant 5.000000e-01 : f32
    %388 = vector.broadcast %cst_132 : f32 to vector<8x1xf32>
    %389 = arith.mulf %388, %387 : vector<8x1xf32>
    %390 = vector.broadcast %389 : vector<8x1xf32> to vector<8x128xf32>
    %391 = arith.subf %7, %390 : vector<8x128xf32>
    %cst_133 = arith.constant 0.000000e+00 : f32
    %392 = vector.broadcast %cst_133 : f32 to vector<8x128xf32>
    %393 = arith.maximumf %391, %392 : vector<8x128xf32>
    %cst_134 = arith.constant dense<0.000000e+00> : vector<8xf32>
    %394 = vector.multi_reduction <add>, %393, %cst_134 [1] : vector<8x128xf32> to vector<8xf32>
    %395 = vector.shape_cast %394 : vector<8xf32> to vector<8x1xf32>
    %cst_135 = arith.constant 1.000000e+00 : f32
    %396 = vector.broadcast %cst_135 : f32 to vector<8x1xf32>
    %397 = arith.subf %395, %396 : vector<8x1xf32>
    %cst_136 = arith.constant 0.000000e+00 : f32
    %398 = vector.broadcast %cst_136 : f32 to vector<8x1xf32>
    %399 = arith.cmpf ogt, %397, %398 : vector<8x1xf32>
    %400 = arith.select %399, %389, %385 : vector<8x1xi1>, vector<8x1xf32>
    %401 = arith.select %399, %386, %389 : vector<8x1xi1>, vector<8x1xf32>
    %402 = arith.addf %400, %401 : vector<8x1xf32>
    %cst_137 = arith.constant 5.000000e-01 : f32
    %403 = vector.broadcast %cst_137 : f32 to vector<8x1xf32>
    %404 = arith.mulf %403, %402 : vector<8x1xf32>
    %405 = vector.broadcast %404 : vector<8x1xf32> to vector<8x128xf32>
    %406 = arith.cmpf ogt, %7, %405 : vector<8x128xf32>
    %407 = vector.broadcast %9 : vector<8x1xf32> to vector<8x128xf32>
    %408 = arith.cmpf oge, %7, %407 : vector<8x128xf32>
    %409 = arith.ori %406, %408 : vector<8x128xi1>
    %410 = arith.extui %409 : vector<8x128xi1> to vector<8x128xi32>
    %411 = arith.sitofp %410 : vector<8x128xi32> to vector<8x128xf32>
    %cst_138 = arith.constant dense<0.000000e+00> : vector<8xf32>
    %412 = vector.multi_reduction <add>, %411, %cst_138 [1] : vector<8x128xf32> to vector<8xf32>
    %413 = vector.shape_cast %412 : vector<8xf32> to vector<8x1xf32>
    %414 = arith.mulf %7, %411 : vector<8x128xf32>
    %cst_139 = arith.constant dense<0.000000e+00> : vector<8xf32>
    %415 = vector.multi_reduction <add>, %414, %cst_139 [1] : vector<8x128xf32> to vector<8xf32>
    %416 = vector.shape_cast %415 : vector<8xf32> to vector<8x1xf32>
    %cst_140 = arith.constant 1.000000e+00 : f32
    %417 = vector.broadcast %cst_140 : f32 to vector<8x1xf32>
    %418 = arith.subf %416, %417 : vector<8x1xf32>
    %419 = arith.divf %418, %413 : vector<8x1xf32>
    %420 = vector.broadcast %419 : vector<8x1xf32> to vector<8x128xf32>
    %421 = arith.subf %7, %420 : vector<8x128xf32>
    %cst_141 = arith.constant 0.000000e+00 : f32
    %422 = vector.broadcast %cst_141 : f32 to vector<8x128xf32>
    %423 = arith.maximumf %421, %422 : vector<8x128xf32>
    %c0_142 = arith.constant 0 : index
    %c0_143 = arith.constant 0 : index
    %424 = vector.load %arg3[%c0_142, %c0_143] : memref<8x128xf32, #tpu.memory_space<vmem>>, vector<8x128xf32>
    tpu.vector_store %arg3[%c0_142, %c0_143], %423 {strides = array<i32>} : memref<8x128xf32, #tpu.memory_space<vmem>>, vector<8x128xf32>,
    return
  }
  func.func @transform_0(%arg0: i32) -> (i32, i32) {
    %c0_i32 = arith.constant 0 : i32
    %c0_i32_0 = arith.constant 0 : i32
    return %arg0, %c0_i32 : i32, i32
  }
  func.func @transform_1(%arg0: i32) -> (i32, i32) {
    %c0_i32 = arith.constant 0 : i32
    %c0_i32_0 = arith.constant 0 : i32
    %c0_i32_1 = arith.constant 0 : i32
    return %c0_i32, %c0_i32_0 : i32, i32
  }
  func.func @transform_2(%arg0: i32) -> (i32, i32) {
    %c0_i32 = arith.constant 0 : i32
    %c0_i32_0 = arith.constant 0 : i32
    return %arg0, %c0_i32 : i32, i32
  }
}

</mosaic_0001>

<bundles_post_ra>
// kernel: tpu_custom_call.1
= control target key start
LH: loop header
LB: loop body
LE: loop exit
PB: predicated region body
PF: predicated region fallthrough
CT: control target
= control target key end

     0   :  { %7 = vsyncpa [#allocation3], 0  ;;  %s1037_s0 = inlined_call_operand.hbm [shape: f32[16,32], index: 0, kind: input, shape index: {}]   ;;  %s1038_s1 = inlined_call_operand.hbm [shape: f32[32,128], index: 1, kind: input, shape index: {}]   ;;  %s1039_s2 = inlined_call_operand.hbm [shape: f32[16,128], index: 2, kind: output, shape index: {}]  }
   0x1   :  { %9 = vsyncpa [#allocation3 + $0x1], 0 }
   0x2   :  { %10 = vsyncpa [#allocation6], 0 }
   0x3   :  { %11 = vsyncpa [#allocation4], 0 }
   0x4   :  { %13 = vsyncpa [#allocation4 + $0x1], 0  ;;  %s858_s9 = smov 0   ;;  %s860_s10 = smov 0  }
   0x5   :  { %s862_s11 = smov 0   ;;  %s864_s12 = smov 0  }
   0x6 LB: > { %s108_s15 = sshll.u32 %s1038_s1, 4  ;;  %s882_s16 = sadd.s32 4294967295, %s837_s12   ;;  %s837_s12 = sphi %s864_s12, %s1049_s12   ;;  %s833_s11 = sphi %s862_s11, %s1048_s11   ;;  %s829_s10 = sphi %s860_s10, %s1047_s10   ;;  %s825_s9 = sphi %s858_s9, %s1046_s9   ;;  %s109_s15 = int_to_ptr.hbm [resolvable:$true] %s108_s15 }
   0x7   : > { %p602_p0 = scmp.ge.s32.totalorder %s837_s12, 1  ;;  %p40_p1 = scmp.eq.s32.totalorder %s882_s16, 0 }
   0x8   : > { %p97_p2 = scmp.lt.s32.totalorder %s837_s12, 3  ;;  %s839_s18 = smov [#allocation5]  }
   0x9   : > { %s110_s19 = sshll.u32 %s839_s18, 4  ;;  %s840_s20 = smov 128   ;;  %s111_s19 = int_to_ptr.vmem [resolvable:$true] %s110_s19 }
   0xa   : > { %p887_p3 = pnand %p602_p0, %p97_p2  ;;  %s841_s21 = smov 8  }
   0xb   : > { %s601_s22 = sadd.s32 4294967294, %s837_s12   ;;  %s898_s23 = sadd.s32 1, %s837_s12  }
   0xc   : > { %p653_p4 = pneg %p887_p3  ;;  %s26_s24 = sadd.s32 1, %s833_s11 }
   0xd   : > { %s23_s25 = ssub.s32 %s837_s12, %s898_s23  ;;  %p33_p7 = scmp.ne.s32.totalorder %s833_s11, %s829_s10 }
   0xe   : > { %p654_p6 = pnand %p653_p4, %p40_p1  ;;  %p24_p8 = scmp.eq.s32.totalorder %s23_s25, 0 }
   0xf   : > { %p34_p9 = scmp.eq.s32.totalorder %s837_s12, 0  ;;  %p39_p10 = scmp.ne.s32.totalorder %s829_s10, %s825_s9 }
  0x10   : > { %656 = dma.hbm_to_vmem [thread:$0]  (!%p654_p6), %s109_s15, 512, %s111_s19, [#allocation6], %s840_s20, %s840_s20, %s841_s21  }
  0x11   : > { %p84_p11 = scmp.eq.s32.totalorder %s882_s16, 1  ;;  %p914_p12 = por %p40_p1, %p39_p10 }
  0x12   : > { %s910_s26 = scalar_select %p24_p8, %s833_s11, %s26_s24  }
  0x13   : > { %p918_p13 = por %p84_p11, %p33_p7  ;;  %p90_p0 = scmp.eq.s32.totalorder %s601_s22, 1 }
  0x14   : > { %p35_p2 = por %p34_p9, %p33_p7  ;;  %s124_s29 = sand.u32 1, %s833_s11  }
  0x15   : > { %p923_p4 = por %p90_p0, %p39_p10  ;;  %p666_p6 = scmp.lt.s32.totalorder %s837_s12, 2 }
  0x16   : > { %s605_s3 = sshll.u32 %s124_s29, 3  ;;  %s606_s4 = sshll.u32 %s837_s12, 3 }
  0x17   : > { %s132_s7 = scalar_lea.hbm %s1037_s0, %s606_s4  ;;  %s128_s13 = scalar_lea.vmem [#allocation2], %s605_s3 }
  0x18   : > { %s134_s8 = sshll.u32 %s132_s7, 4  ;;  %s136_s14 = sshll.u32 %s128_s13, 4  ;;  %s135_s8 = int_to_ptr.hbm [resolvable:$true] %s134_s8  ;;  %s137_s14 = int_to_ptr.vmem [resolvable:$true] %s136_s14 }
  0x19   : > { %p932_p8 = pnand %p666_p6, %p35_p2  ;;  %s125_s18 = scalar_lea.sflag [#allocation3], %s124_s29 }
  0x1a   : > { %s737_s19 = sshra.s32 %s135_s8, 4  ;;  %s744_s24 = scalar_lea.hbm %s1037_s0, 16  ;;  %s738_s19 = int_to_ptr.hbm [resolvable:$true] %s737_s19 }
  0x1b   : > { %s739_s20 = scalar_lea.hbm %s738_s19, 8  ;;  %p741_p9 = pneg %p932_p8 }
  0x1c   : > { %p740_p7 = scmp.ne.s32.totalorder %s738_s19, %s739_s20  ;;  %p745_p0 = scmp.lt.s32.totalorder %s738_s19, %s1037_s0 }
  0x1d   : > { %p746_p2 = scmp.lt.s32.totalorder %s744_s24, %s739_s20 }
  0x1e   : > { %p742_p10 = pnand %p741_p9, %p740_p7 }
  0x1f   : > { %p747_p6 = por %p746_p2, %p745_p0 }
  0x20   : > { %p743_p11 = pneg %p742_p10 }
  0x22   : > { %p748_p5 = pnand %p747_p6, %p743_p11 }
  0x24   : > { %751 = shalt.err (!%p748_p5)
}
  0x25   : > { %660 = dma.hbm_to_vmem [thread:$0]  (!%p932_p8), %s135_s8, 128, %s137_s14, %s125_s18  }
  0x26   : > { %145 = sbr.rel (%p887_p3) target bundleno = 3776 (0xec0), region = 28  ;;  %s949_s29 = sand.u32 (!%p887_p3), 1, %s829_s10  }
  0x27   : > { %s608_s4 = sshll.u32 (!%p887_p3), %s949_s29, 3  ;;  %s148_s5 = scalar_lea.sflag (!%p887_p3), [#allocation3], %s949_s29 }
  0x28   : > { %s151_s6 = scalar_lea.vmem (!%p887_p3), [#allocation2], %s608_s4 }
  0x2b   : > { %812 = dma.done.wait (%p914_p12), %s148_s5, 128  }
  0x2c   : > { %814 = vsyncadd (%p914_p12), %s148_s5, 4294967168 }
  0x2d   : > { %816 = dma.done.wait (%p40_p1), [#allocation6], 512  }
  0x2e   : > { %818 = vsyncadd (%p40_p1), [#allocation6], 4294966784  ;;  %v182_v0 = vld [vmem:[#allocation5 + $0x18] sm:$0xff]  ;;  %v181_v1 = vld [vmem:[#allocation5 + $0x10] sm:$0xff]  ;;  %vm183_vm0 = vcmask 261120   ;;  %v207_v5 = vlaneseq  ;;  %s642_s17 = sshll.u32 %s882_s16, 3 }
  0x2f   : > { %199 = vmatpush.msra.mxu0 %v182_v0  ;;  %v180_v2 = vld [vmem:[#allocation5 + $0x8] sm:$0xff]  ;;  %v179_v3 = vld [vmem:[#allocation5] sm:$0xff]  ;;  %v178_v4 = vld [vmem:[%s151_s6] sm:$0xff]  ;;  %s516_s8 = scalar_lea.hbm %s1039_s2, %s642_s17  ;;  %s177_s13 = scalar_lea.vmem [#allocation7], %s608_s4 }
  0x30   : > { %v208_v6 = vand.u32 127, %v207_v5  ;;  %s518_s14 = sshll.u32 %s177_s13, 4  ;;  %s520_s15 = sshll.u32 %s516_s8, 4  ;;  %s519_s14 = int_to_ptr.vmem [resolvable:$true] %s518_s14  ;;  %s521_s15 = int_to_ptr.hbm [resolvable:$true] %s520_s15 }
  0x31   : > { %200 = vmatpush.msra.mxu0 %v181_v1  ;;  %s506_s16 = scalar_lea.sflag [#allocation4], %s949_s29  ;;  %s781_s18 = sshra.s32 %s521_s15, 4  ;;  %s782_s18 = int_to_ptr.hbm [resolvable:$true] %s781_s18 }
  0x32   : > { %vm209_vm1 = vcmp.lt.s32.totalorder %v208_v6, 16  ;;  %s783_s19 = scalar_lea.hbm %s782_s18, 8  ;;  %s787_s22 = scalar_lea.hbm %s1039_s2, 16 }
  0x33   : > { %201 = vmatpush.msra.mxu0 %v180_v2  ;;  %p784_p1 = scmp.ne.s32.totalorder %s782_s18, %s783_s19  ;;  %p788_p12 = scmp.lt.s32.totalorder %s782_s18, %s1039_s2 }
  0x34   : > { %p789_p8 = scmp.lt.s32.totalorder %s787_s22, %s783_s19 }
  0x35   : > { %202 = vmatpush.msra.mxu0 %v179_v3  ;;  %p785_p3 = pnand %p784_p1, %p918_p13 }
  0x36   : > { %611 = vmatmul.msk.f32.vlgmr.msra.gmra.mxu0 %vm183_vm0, %v178_v4  ;;  %p790_p7 = por %p789_p8, %p788_p12 }
  0x37   : > { %p786_p5 = pneg %p785_p3 }
  0x39   : > { %p791_p9 = pnand %p790_p7, %p786_p5 }
  0xb3   : > { %v204_v7 = vpop.f32.mrf.mxu0 }
  0xb4   : > { %v963_v8 = vsel %vm209_vm1, %v204_v7, -1e+30 }
  0xb5   : > { %211 = vmax.xlane.f32.xlu0 %v963_v8 }
 0x128   : > { %v966_v9 = vpop.xlane.xlu0 %211 }
 0x129   : > { %v612_v10 = vadd.f32 -1.0, %v966_v9 }
 0x12b   : > { %v214_v11 = vadd.f32 %v612_v10, %v966_v9 }
 0x12d   : > { %v215_v12 = vmul.f32 0.5, %v214_v11 }
 0x12f   : > { %v216_v13 = vsub.f32 %v963_v8, %v215_v12 }
 0x131   : > { %v217_v14 = vmax.f32 %v216_v13, 0.0 }
 0x133   : > { %218 = vadd.xlane.f32.xlu0 %v217_v14 }
 0x1a6   : > { %v219_v15 = vpop.xlane.xlu0 %218 }
 0x1a7   : > { %v613_v16 = vadd.f32 -1.0, %v219_v15 }
 0x1a9   : > { %vm221_vm2 = vcmp.gt.f32.partialorder %v613_v16, 0.0 }
 0x1aa   : > { %v222_v17 = vsel %vm221_vm2, %v215_v12, %v612_v10  ;;  %v223_v18 = vsel %vm221_vm2, %v966_v9, %v215_v12 }
 0x1ab   : > { %v224_v19 = vadd.f32 %v223_v18, %v222_v17 }
 0x1ad   : > { %v225_v20 = vmul.f32 0.5, %v224_v19 }
 0x1af   : > { %v226_v21 = vsub.f32 %v963_v8, %v225_v20 }
 0x1b1   : > { %v227_v22 = vmax.f32 %v226_v21, 0.0 }
 0x1b3   : > { %228 = vadd.xlane.f32.xlu1 %v227_v22 }
 0x226   : > { %v229_v23 = vpop.xlane.xlu1 %228 }
 0x227   : > { %v614_v24 = vadd.f32 -1.0, %v229_v23 }
 0x229   : > { %vm231_vm3 = vcmp.gt.f32.partialorder %v614_v24, 0.0 }
 0x22a   : > { %v232_v25 = vsel %vm231_vm3, %v225_v20, %v222_v17  ;;  %v233_v26 = vsel %vm231_vm3, %v223_v18, %v225_v20 }
 0x22b   : > { %v234_v27 = vadd.f32 %v233_v26, %v232_v25 }
 0x22d   : > { %v235_v28 = vmul.f32 0.5, %v234_v27 }
 0x22f   : > { %v236_v29 = vsub.f32 %v963_v8, %v235_v28 }
 0x231   : > { %v237_v30 = vmax.f32 %v236_v29, 0.0 }
 0x233   : > { %238 = vadd.xlane.f32.xlu1 %v237_v30 }
 0x2a6   : > { %v239_v31 = vpop.xlane.xlu1 %238 }
 0x2a7   : > { %v615_v32 = vadd.f32 -1.0, %v239_v31 }
 0x2a9   : > { %vm241_vm4 = vcmp.gt.f32.partialorder %v615_v32, 0.0 }
 0x2aa   : > { %v242_v33 = vsel %vm241_vm4, %v235_v28, %v232_v25  ;;  %v243_v34 = vsel %vm241_vm4, %v233_v26, %v235_v28 }
 0x2ab   : > { %v244_v35 = vadd.f32 %v243_v34, %v242_v33 }
 0x2ad   : > { %v245_v36 = vmul.f32 0.5, %v244_v35 }
 0x2af   : > { %v246_v37 = vsub.f32 %v963_v8, %v245_v36 }
 0x2b1   : > { %v247_v38 = vmax.f32 %v246_v37, 0.0 }
 0x2b3   : > { %248 = vadd.xlane.f32.xlu2 %v247_v38 }
 0x326   : > { %v249_v39 = vpop.xlane.xlu2 %248 }
 0x327   : > { %v616_v40 = vadd.f32 -1.0, %v249_v39 }
 0x329   : > { %vm251_vm5 = vcmp.gt.f32.partialorder %v616_v40, 0.0 }
 0x32a   : > { %v252_v41 = vsel %vm251_vm5, %v245_v36, %v242_v33  ;;  %v253_v42 = vsel %vm251_vm5, %v243_v34, %v245_v36 }
 0x32b   : > { %v254_v43 = vadd.f32 %v253_v42, %v252_v41 }
 0x32d   : > { %v255_v44 = vmul.f32 0.5, %v254_v43 }
 0x32f   : > { %v256_v45 = vsub.f32 %v963_v8, %v255_v44 }
 0x331   : > { %v257_v46 = vmax.f32 %v256_v45, 0.0 }
 0x333   : > { %258 = vadd.xlane.f32.xlu2 %v257_v46 }
 0x3a6   : > { %v259_v47 = vpop.xlane.xlu2 %258 }
 0x3a7   : > { %v617_v48 = vadd.f32 -1.0, %v259_v47 }
 0x3a9   : > { %vm261_vm6 = vcmp.gt.f32.partialorder %v617_v48, 0.0 }
 0x3aa   : > { %v262_v49 = vsel %vm261_vm6, %v255_v44, %v252_v41  ;;  %v263_v50 = vsel %vm261_vm6, %v253_v42, %v255_v44 }
 0x3ab   : > { %v264_v51 = vadd.f32 %v263_v50, %v262_v49 }
 0x3ad   : > { %v265_v52 = vmul.f32 0.5, %v264_v51 }
 0x3af   : > { %v266_v53 = vsub.f32 %v963_v8, %v265_v52 }
 0x3b1   : > { %v267_v54 = vmax.f32 %v266_v53, 0.0 }
 0x3b3   : > { %268 = vadd.xlane.f32.xlu0 %v267_v54 }
 0x426   : > { %v269_v55 = vpop.xlane.xlu0 %268 }
 0x427   : > { %v618_v56 = vadd.f32 -1.0, %v269_v55 }
 0x429   : > { %vm271_vm7 = vcmp.gt.f32.partialorder %v618_v56, 0.0 }
 0x42a   : > { %v272_v57 = vsel %vm271_vm7, %v265_v52, %v262_v49  ;;  %v273_v58 = vsel %vm271_vm7, %v263_v50, %v265_v52 }
 0x42b   : > { %v274_v59 = vadd.f32 %v273_v58, %v272_v57 }
 0x42d   : > { %v275_v60 = vmul.f32 0.5, %v274_v59 }
 0x42f   : > { %v276_v61 = vsub.f32 %v963_v8, %v275_v60 }
 0x431   : > { %v277_v62 = vmax.f32 %v276_v61, 0.0 }
 0x433   : > { %278 = vadd.xlane.f32.xlu1 %v277_v62 }
 0x4a6   : > { %v279_v63 = vpop.xlane.xlu1 %278 }
 0x4a7   : > { %v619_v0 = vadd.f32 -1.0, %v279_v63 }
 0x4a9   : > { %vm281_vm8 = vcmp.gt.f32.partialorder %v619_v0, 0.0 }
 0x4aa   : > { %v282_v1 = vsel %vm281_vm8, %v275_v60, %v272_v57  ;;  %v283_v2 = vsel %vm281_vm8, %v273_v58, %v275_v60 }
 0x4ab   : > { %v284_v3 = vadd.f32 %v283_v2, %v282_v1 }
 0x4ad   : > { %v285_v4 = vmul.f32 0.5, %v284_v3 }
 0x4af   : > { %v286_v5 = vsub.f32 %v963_v8, %v285_v4 }
 0x4b1   : > { %v287_v6 = vmax.f32 %v286_v5, 0.0 }
 0x4b3   : > { %288 = vadd.xlane.f32.xlu2 %v287_v6 }
 0x526   : > { %v289_v7 = vpop.xlane.xlu2 %288 }
 0x527   : > { %v620_v10 = vadd.f32 -1.0, %v289_v7 }
 0x529   : > { %vm291_vm9 = vcmp.gt.f32.partialorder %v620_v10, 0.0 }
 0x52a   : > { %v292_v11 = vsel %vm291_vm9, %v285_v4, %v282_v1  ;;  %v293_v12 = vsel %vm291_vm9, %v283_v2, %v285_v4 }
 0x52b   : > { %v294_v13 = vadd.f32 %v293_v12, %v292_v11 }
 0x52d   : > { %v295_v14 = vmul.f32 0.5, %v294_v13 }
 0x52f   : > { %v296_v15 = vsub.f32 %v963_v8, %v295_v14 }
 0x531   : > { %v297_v16 = vmax.f32 %v296_v15, 0.0 }
 0x533   : > { %298 = vadd.xlane.f32.xlu0 %v297_v16 }
 0x5a6   : > { %v299_v17 = vpop.xlane.xlu0 %298 }
 0x5a7   : > { %v621_v18 = vadd.f32 -1.0, %v299_v17 }
 0x5a9   : > { %vm301_vm10 = vcmp.gt.f32.partialorder %v621_v18, 0.0 }
 0x5aa   : > { %v302_v19 = vsel %vm301_vm10, %v295_v14, %v292_v11  ;;  %v303_v20 = vsel %vm301_vm10, %v293_v12, %v295_v14 }
 0x5ab   : > { %v304_v21 = vadd.f32 %v303_v20, %v302_v19 }
 0x5ad   : > { %v305_v22 = vmul.f32 0.5, %v304_v21 }
 0x5af   : > { %v306_v23 = vsub.f32 %v963_v8, %v305_v22 }
 0x5b1   : > { %v307_v24 = vmax.f32 %v306_v23, 0.0 }
 0x5b3   : > { %308 = vadd.xlane.f32.xlu1 %v307_v24 }
 0x626   : > { %v309_v25 = vpop.xlane.xlu1 %308 }
 0x627   : > { %v622_v26 = vadd.f32 -1.0, %v309_v25 }
 0x629   : > { %vm311_vm11 = vcmp.gt.f32.partialorder %v622_v26, 0.0 }
 0x62a   : > { %v312_v27 = vsel %vm311_vm11, %v305_v22, %v302_v19  ;;  %v313_v28 = vsel %vm311_vm11, %v303_v20, %v305_v22 }
 0x62b   : > { %v314_v29 = vadd.f32 %v313_v28, %v312_v27 }
 0x62d   : > { %v315_v30 = vmul.f32 0.5, %v314_v29 }
 0x62f   : > { %v316_v31 = vsub.f32 %v963_v8, %v315_v30 }
 0x631   : > { %v317_v32 = vmax.f32 %v316_v31, 0.0 }
 0x633   : > { %318 = vadd.xlane.f32.xlu2 %v317_v32 }
 0x6a6   : > { %v319_v33 = vpop.xlane.xlu2 %318 }
 0x6a7   : > { %v623_v34 = vadd.f32 -1.0, %v319_v33 }
 0x6a9   : > { %vm321_vm12 = vcmp.gt.f32.partialorder %v623_v34, 0.0 }
 0x6aa   : > { %v322_v35 = vsel %vm321_vm12, %v315_v30, %v312_v27  ;;  %v323_v36 = vsel %vm321_vm12, %v313_v28, %v315_v30 }
 0x6ab   : > { %v324_v37 = vadd.f32 %v323_v36, %v322_v35 }
 0x6ad   : > { %v325_v38 = vmul.f32 0.5, %v324_v37 }
 0x6af   : > { %v326_v39 = vsub.f32 %v963_v8, %v325_v38 }
 0x6b1   : > { %v327_v40 = vmax.f32 %v326_v39, 0.0 }
 0x6b3   : > { %328 = vadd.xlane.f32.xlu0 %v327_v40 }
 0x726   : > { %v329_v41 = vpop.xlane.xlu0 %328 }
 0x727   : > { %v624_v42 = vadd.f32 -1.0, %v329_v41 }
 0x729   : > { %vm331_vm13 = vcmp.gt.f32.partialorder %v624_v42, 0.0 }
 0x72a   : > { %v332_v43 = vsel %vm331_vm13, %v325_v38, %v322_v35  ;;  %v333_v44 = vsel %vm331_vm13, %v323_v36, %v325_v38  ;;  %vm477_vm13 = vcmp.ge.f32.partialorder %v963_v8, %v966_v9 }
 0x72b   : > { %v334_v45 = vadd.f32 %v333_v44, %v332_v43 }
 0x72d   : > { %v335_v46 = vmul.f32 0.5, %v334_v45 }
 0x72f   : > { %v336_v47 = vsub.f32 %v963_v8, %v335_v46 }
 0x731   : > { %v337_v48 = vmax.f32 %v336_v47, 0.0 }
 0x733   : > { %338 = vadd.xlane.f32.xlu1 %v337_v48 }
 0x7a6   : > { %v339_v49 = vpop.xlane.xlu1 %338 }
 0x7a7   : > { %v625_v50 = vadd.f32 -1.0, %v339_v49 }
 0x7a9   : > { %vm341_vm14 = vcmp.gt.f32.partialorder %v625_v50, 0.0 }
 0x7aa   : > { %v342_v51 = vsel %vm341_vm14, %v335_v46, %v332_v43  ;;  %v343_v52 = vsel %vm341_vm14, %v333_v44, %v335_v46 }
 0x7ab   : > { %v344_v53 = vadd.f32 %v343_v52, %v342_v51 }
 0x7ad   : > { %v345_v54 = vmul.f32 0.5, %v344_v53 }
 0x7af   : > { %v346_v55 = vsub.f32 %v963_v8, %v345_v54 }
 0x7b1   : > { %v347_v56 = vmax.f32 %v346_v55, 0.0 }
 0x7b3   : > { %348 = vadd.xlane.f32.xlu2 %v347_v56 }
 0x826   : > { %v349_v57 = vpop.xlane.xlu2 %348 }
 0x827   : > { %v626_v58 = vadd.f32 -1.0, %v349_v57 }
 0x829   : > { %vm351_vm15 = vcmp.gt.f32.partialorder %v626_v58, 0.0 }
 0x82a   : > { %v352_v59 = vsel %vm351_vm15, %v345_v54, %v342_v51  ;;  %v353_v60 = vsel %vm351_vm15, %v343_v52, %v345_v54 }
 0x82b   : > { %v354_v61 = vadd.f32 %v353_v60, %v352_v59 }
 0x82d   : > { %v355_v62 = vmul.f32 0.5, %v354_v61 }
 0x82f   : > { %v356_v63 = vsub.f32 %v963_v8, %v355_v62 }
 0x831   : > { %v357_v0 = vmax.f32 %v356_v63, 0.0 }
 0x833   : > { %358 = vadd.xlane.f32.xlu0 %v357_v0 }
 0x8a6   : > { %v359_v1 = vpop.xlane.xlu0 %358 }
 0x8a7   : > { %v627_v2 = vadd.f32 -1.0, %v359_v1 }
 0x8a9   : > { %vm361_vm0 = vcmp.gt.f32.partialorder %v627_v2, 0.0 }
 0x8aa   : > { %v362_v3 = vsel %vm361_vm0, %v355_v62, %v352_v59  ;;  %v363_v4 = vsel %vm361_vm0, %v353_v60, %v355_v62 }
 0x8ab   : > { %v364_v5 = vadd.f32 %v363_v4, %v362_v3 }
 0x8ad   : > { %v365_v6 = vmul.f32 0.5, %v364_v5 }
 0x8af   : > { %v366_v7 = vsub.f32 %v963_v8, %v365_v6 }
 0x8b1   : > { %v367_v10 = vmax.f32 %v366_v7, 0.0 }
 0x8b3   : > { %368 = vadd.xlane.f32.xlu1 %v367_v10 }
 0x926   : > { %v369_v11 = vpop.xlane.xlu1 %368 }
 0x927   : > { %v628_v12 = vadd.f32 -1.0, %v369_v11 }
 0x929   : > { %vm371_vm1 = vcmp.gt.f32.partialorder %v628_v12, 0.0 }
 0x92a   : > { %v372_v13 = vsel %vm371_vm1, %v365_v6, %v362_v3  ;;  %v373_v14 = vsel %vm371_vm1, %v363_v4, %v365_v6 }
 0x92b   : > { %v374_v15 = vadd.f32 %v373_v14, %v372_v13 }
 0x92d   : > { %v375_v16 = vmul.f32 0.5, %v374_v15 }
 0x92f   : > { %v376_v17 = vsub.f32 %v963_v8, %v375_v16 }
 0x931   : > { %v377_v18 = vmax.f32 %v376_v17, 0.0 }
 0x933   : > { %378 = vadd.xlane.f32.xlu2 %v377_v18 }
 0x9a6   : > { %v379_v19 = vpop.xlane.xlu2 %378 }
 0x9a7   : > { %v629_v20 = vadd.f32 -1.0, %v379_v19 }
 0x9a9   : > { %vm381_vm2 = vcmp.gt.f32.partialorder %v629_v20, 0.0 }
 0x9aa   : > { %v382_v21 = vsel %vm381_vm2, %v375_v16, %v372_v13  ;;  %v383_v22 = vsel %vm381_vm2, %v373_v14, %v375_v16 }
 0x9ab   : > { %v384_v23 = vadd.f32 %v383_v22, %v382_v21 }
 0x9ad   : > { %v385_v24 = vmul.f32 0.5, %v384_v23 }
 0x9af   : > { %v386_v25 = vsub.f32 %v963_v8, %v385_v24 }
 0x9b1   : > { %v387_v26 = vmax.f32 %v386_v25, 0.0 }
 0x9b3   : > { %388 = vadd.xlane.f32.xlu0 %v387_v26 }
 0xa26   : > { %v389_v27 = vpop.xlane.xlu0 %388 }
 0xa27   : > { %v630_v28 = vadd.f32 -1.0, %v389_v27 }
 0xa29   : > { %vm391_vm3 = vcmp.gt.f32.partialorder %v630_v28, 0.0 }
 0xa2a   : > { %v392_v29 = vsel %vm391_vm3, %v385_v24, %v382_v21  ;;  %v393_v30 = vsel %vm391_vm3, %v383_v22, %v385_v24 }
 0xa2b   : > { %v394_v31 = vadd.f32 %v393_v30, %v392_v29 }
 0xa2d   : > { %v395_v32 = vmul.f32 0.5, %v394_v31 }
 0xa2f   : > { %v396_v33 = vsub.f32 %v963_v8, %v395_v32 }
 0xa31   : > { %v397_v34 = vmax.f32 %v396_v33, 0.0 }
 0xa33   : > { %398 = vadd.xlane.f32.xlu1 %v397_v34 }
 0xaa6   : > { %v399_v35 = vpop.xlane.xlu1 %398 }
 0xaa7   : > { %v631_v36 = vadd.f32 -1.0, %v399_v35  ;;  %v842_v35 = vmov 0.0  }
 0xaa9   : > { %vm401_vm4 = vcmp.gt.f32.partialorder %v631_v36, 0.0 }
 0xaaa   : > { %v402_v37 = vsel %vm401_vm4, %v395_v32, %v392_v29  ;;  %v403_v38 = vsel %vm401_vm4, %v393_v30, %v395_v32 }
 0xaab   : > { %v404_v39 = vadd.f32 %v403_v38, %v402_v37 }
 0xaad   : > { %v405_v40 = vmul.f32 0.5, %v404_v39 }
 0xaaf   : > { %v406_v41 = vsub.f32 %v963_v8, %v405_v40 }
 0xab1   : > { %v407_v42 = vmax.f32 %v406_v41, 0.0 }
 0xab3   : > { %408 = vadd.xlane.f32.xlu2 %v407_v42 }
 0xb26   : > { %v409_v43 = vpop.xlane.xlu2 %408 }
 0xb27   : > { %v632_v44 = vadd.f32 -1.0, %v409_v43 }
 0xb29   : > { %vm411_vm5 = vcmp.gt.f32.partialorder %v632_v44, 0.0 }
 0xb2a   : > { %v412_v45 = vsel %vm411_vm5, %v405_v40, %v402_v37  ;;  %v413_v46 = vsel %vm411_vm5, %v403_v38, %v405_v40 }
 0xb2b   : > { %v414_v47 = vadd.f32 %v413_v46, %v412_v45 }
 0xb2d   : > { %v415_v48 = vmul.f32 0.5, %v414_v47 }
 0xb2f   : > { %v416_v49 = vsub.f32 %v963_v8, %v415_v48 }
 0xb31   : > { %v417_v50 = vmax.f32 %v416_v49, 0.0 }
 0xb33   : > { %418 = vadd.xlane.f32.xlu0 %v417_v50 }
 0xba6   : > { %v419_v51 = vpop.xlane.xlu0 %418 }
 0xba7   : > { %v633_v52 = vadd.f32 -1.0, %v419_v51 }
 0xba9   : > { %vm421_vm6 = vcmp.gt.f32.partialorder %v633_v52, 0.0 }
 0xbaa   : > { %v422_v53 = vsel %vm421_vm6, %v415_v48, %v412_v45  ;;  %v423_v54 = vsel %vm421_vm6, %v413_v46, %v415_v48 }
 0xbab   : > { %v424_v55 = vadd.f32 %v423_v54, %v422_v53 }
 0xbad   : > { %v425_v56 = vmul.f32 0.5, %v424_v55 }
 0xbaf   : > { %v426_v57 = vsub.f32 %v963_v8, %v425_v56 }
 0xbb1   : > { %v427_v58 = vmax.f32 %v426_v57, 0.0 }
 0xbb3   : > { %428 = vadd.xlane.f32.xlu1 %v427_v58 }
 0xc26   : > { %v429_v59 = vpop.xlane.xlu1 %428 }
 0xc27   : > { %v634_v60 = vadd.f32 -1.0, %v429_v59 }
 0xc29   : > { %vm431_vm7 = vcmp.gt.f32.partialorder %v634_v60, 0.0 }
 0xc2a   : > { %v432_v61 = vsel %vm431_vm7, %v425_v56, %v422_v53  ;;  %v433_v62 = vsel %vm431_vm7, %v423_v54, %v425_v56 }
 0xc2b   : > { %v434_v63 = vadd.f32 %v433_v62, %v432_v61 }
 0xc2d   : > { %v435_v0 = vmul.f32 0.5, %v434_v63 }
 0xc2f   : > { %v436_v1 = vsub.f32 %v963_v8, %v435_v0 }
 0xc31   : > { %v437_v2 = vmax.f32 %v436_v1, 0.0 }
 0xc33   : > { %438 = vadd.xlane.f32.xlu2 %v437_v2 }
 0xca6   : > { %v439_v3 = vpop.xlane.xlu2 %438 }
 0xca7   : > { %v635_v4 = vadd.f32 -1.0, %v439_v3 }
 0xca9   : > { %vm441_vm8 = vcmp.gt.f32.partialorder %v635_v4, 0.0 }
 0xcaa   : > { %v442_v5 = vsel %vm441_vm8, %v435_v0, %v432_v61  ;;  %v443_v6 = vsel %vm441_vm8, %v433_v62, %v435_v0 }
 0xcab   : > { %v444_v7 = vadd.f32 %v443_v6, %v442_v5 }
 0xcad   : > { %v445_v10 = vmul.f32 0.5, %v444_v7 }
 0xcaf   : > { %v446_v11 = vsub.f32 %v963_v8, %v445_v10 }
 0xcb1   : > { %v447_v12 = vmax.f32 %v446_v11, 0.0 }
 0xcb3   : > { %448 = vadd.xlane.f32.xlu0 %v447_v12 }
 0xd26   : > { %v449_v13 = vpop.xlane.xlu0 %448 }
 0xd27   : > { %v636_v14 = vadd.f32 -1.0, %v449_v13 }
 0xd29   : > { %vm451_vm9 = vcmp.gt.f32.partialorder %v636_v14, 0.0 }
 0xd2a   : > { %v452_v15 = vsel %vm451_vm9, %v445_v10, %v442_v5  ;;  %v453_v16 = vsel %vm451_vm9, %v443_v6, %v445_v10 }
 0xd2b   : > { %v454_v17 = vadd.f32 %v453_v16, %v452_v15 }
 0xd2d   : > { %v455_v18 = vmul.f32 0.5, %v454_v17 }
 0xd2f   : > { %v456_v19 = vsub.f32 %v963_v8, %v455_v18 }
 0xd31   : > { %v457_v20 = vmax.f32 %v456_v19, 0.0 }
 0xd33   : > { %458 = vadd.xlane.f32.xlu1 %v457_v20 }
 0xda6   : > { %v459_v21 = vpop.xlane.xlu1 %458 }
 0xda7   : > { %v637_v22 = vadd.f32 -1.0, %v459_v21 }
 0xda9   : > { %vm461_vm10 = vcmp.gt.f32.partialorder %v637_v22, 0.0 }
 0xdaa   : > { %v462_v23 = vsel %vm461_vm10, %v455_v18, %v452_v15  ;;  %v463_v24 = vsel %vm461_vm10, %v453_v16, %v455_v18 }
 0xdab   : > { %v464_v25 = vadd.f32 %v463_v24, %v462_v23 }
 0xdad   : > { %v465_v26 = vmul.f32 0.5, %v464_v25 }
 0xdaf   : > { %v466_v27 = vsub.f32 %v963_v8, %v465_v26 }
 0xdb1   : > { %v467_v28 = vmax.f32 %v466_v27, 0.0 }
 0xdb3   : > { %468 = vadd.xlane.f32.xlu2 %v467_v28 }
 0xe26   : > { %v469_v29 = vpop.xlane.xlu2 %468 }
 0xe27   : > { %v638_v30 = vadd.f32 -1.0, %v469_v29 }
 0xe29   : > { %vm471_vm11 = vcmp.gt.f32.partialorder %v638_v30, 0.0 }
 0xe2a   : > { %v472_v31 = vsel %vm471_vm11, %v465_v26, %v462_v23  ;;  %v473_v32 = vsel %vm471_vm11, %v463_v24, %v465_v26 }
 0xe2b   : > { %v474_v33 = vadd.f32 %v473_v32, %v472_v31 }
 0xe2d   : > { %v475_v34 = vmul.f32 0.5, %v474_v33 }
 0xe2f   : > { %vm476_vm12 = vcmp.gt.f32.partialorder %v963_v8, %v475_v34 }
 0xe30   : > { %vm478_vm14 = vmor %vm476_vm12, %vm477_vm13 }
 0xe31   : > { %v639_v36 = vsel %vm478_vm14, 1.0, %v842_v35 }
 0xe32   : > { %481 = vadd.xlane.f32.xlu0 %v639_v36  ;;  %v483_v37 = vmul.f32 %v639_v36, %v963_v8 }
 0xe34   : > { %484 = vadd.xlane.f32.xlu1 %v483_v37 }
 0xea5   : > { %v482_v38 = vpop.xlane.xlu0 %481 }
 0xea6   : > { %705 = vrcp.f32 %v482_v38  ;;  %v498_v42 = vand.u32 2147483648, %v482_v38  ;;  %v496_v44 = vand.u32 2147483647, %v482_v38  ;;  %vm492_vm0 = vweird.f32 %v482_v38 }
 0xea7   : > { %v485_v45 = vpop.xlane.xlu1 %484 }
 0xea8   : > { %v499_v46 = vor.u32 1.1754944e-38, %v498_v42  ;;  %vm497_vm2 = vcmp.eq.f32.partialorder %v496_v44, 8.507059e+37  ;;  %v640_v48 = vadd.f32 -1.0, %v485_v45 }
 0xeac   : > { %v706_v39 = vpop.eup %705 }
 0xead   : > { %v488_v40 = vmul.f32 %v706_v39, %v482_v38  ;;  %vm493_vm15 = vweird.f32 %v706_v39 }
 0xeae   : > { %vm494_vm1 = vmor %vm492_vm0, %vm493_vm15 }
 0xeaf   : > { %v489_v41 = vsub.f32 1.0, %v488_v40 }
 0xeb1   : > { %v490_v43 = vmul.f32 %v706_v39, %v489_v41 }
 0xeb3   : > { %v491_v9 = vadd.f32 %v706_v39, %v490_v43 }
 0xeb5   : > { %v495_v47 = vsel %vm494_vm1, %v706_v39, %v491_v9 }
 0xeb6   : > { %v500_v49 = vsel %vm497_vm2, %v499_v46, %v495_v47 }
 0xeb7   : > { %v501_v50 = vmul.f32 %v640_v48, %v500_v49 }
 0xeb9   : > { %v502_v51 = vsub.f32 %v963_v8, %v501_v50 }
 0xebb   : > { %v503_v52 = vmax.f32 %v502_v51, 0.0 }
 0xebd   : > { %504 = vst [vmem:[%s177_s13] sm:$0xff] %v503_v52 }
 0xebe   : > { %794 = shalt.err (!%p791_p9)
}
 0xebf   : > { %651 = dma.vmem_to_hbm [thread:$0]  (%p918_p13), %s519_s14, 128, %s521_s15, %s506_s16  }
 0xec0 PF: > { %s532_s3 = sand.u32 1, %s825_s9   ;;  %p1045_p10 = scmp.ge.s32.totalorder %s837_s12, 2 }
 0xec1   : > { %s533_s29 = scalar_lea.sflag [#allocation4], %s532_s3 }
 0xec2   : > { %p662_p11 = pnand %p1045_p10, %p923_p4 }
 0xec4   : > { %p663_p0 = pneg %p662_p11 }
 0xec6   : > { %820 = dma.done.wait (%p663_p0), %s533_s29, 128  }
 0xec7   : > { %822 = vsyncadd (%p663_p0), %s533_s29, 4294967168  ;;  %p16_p2 = scmp.ge.s32.totalorder %s898_s23, 4   ;;  %s1046_s9 = smov %s829_s10 }
 0xec8   : > { %s1047_s10 = smov %s833_s11  ;;  %s1048_s11 = smov %s910_s26 }
 0xec9   : > { %s1049_s12 = smov %s898_s23  ;;  %18 = sbr.rel (!%p16_p2) target bundleno = 6 (0x6), region = 77 }
 0xece   :  { %539 = vsyncpa [#allocation3], 1 }
 0xecf   :  { %541 = vsyncpa [#allocation3 + $0x1], 1 }
 0xed0   :  { %542 = vsyncpa [#allocation6], 1 }
 0xed1   :  { %543 = vsyncpa [#allocation4], 1 }
 0xed2   :  { %545 = vsyncpa [#allocation4 + $0x1], 1 }

</bundles_post_ra>
